<compile_context>
chip_gen: v6e
topology: v6e:2x2x1
jax: 0.10.0
libtpu: 0.0.40
codegen_flags: <defaults>
</compile_context>

<pallas_src>
import math
import jax
import jax.numpy as jnp
from jax.experimental import pallas as pl
from jax.experimental.pallas import tpu as pltpu

_BF16_SUBLANE = 16  # bf16 vreg packs (16, 128); keep batch tiles 16-aligned


def _round_up(x: int, m: int) -> int:
    return ((x + m - 1) // m) * m


# ---------------------------------------------------------------------------
# Kernel
# ---------------------------------------------------------------------------
def make_mlp_kernel(num_hidden_layers: int, compute_dtype):
    """Fused MLP kernel over one batch tile.

    Ref order: x_tile, (w0, b0), (w1, b1), ..., (w_last, b_last), out_tile.
    Layers are unrolled at trace time (shapes are static). Matmuls run on the
    MXU with f32 accumulation; bias add + ReLU run on the VPU in f32.
    """

    def kernel(*refs):
        x_ref = refs[0]
        out_ref = refs[-1]
        params = refs[1:-1]
        # Cast to compute dtype in-register (no wrapper HBM cast pass).
        h = x_ref[...].astype(compute_dtype)
        n_linear = num_hidden_layers + 1
        for i in range(n_linear):
            w = params[2 * i][...]        # (d_in, d_out), compute_dtype
            b = params[2 * i + 1][...]    # (1, d_out), f32
            acc = jnp.dot(h, w, preferred_element_type=jnp.float32) + b
            if i < num_hidden_layers:
                acc = jnp.maximum(acc, 0.0)          # ReLU in f32
                h = acc.astype(compute_dtype)        # back for next MXU pass
            else:
                h = acc
        out_ref[...] = h.astype(out_ref.dtype)

    return kernel


# ---------------------------------------------------------------------------
# Wrapper
# ---------------------------------------------------------------------------
def prepare_coupling_params(weights, biases, compute_dtype=jnp.bfloat16):
    """One-time parameter prep: cast weights to compute dtype, biases -> (1, d) f32.

    Call once (weights never change shape); the forward then reuses the result
    instead of re-running cast/scatter passes on every call.
    """
    weights_c = [jnp.asarray(w, jnp.float32).astype(compute_dtype) for w in weights]
    biases_c = [jnp.reshape(jnp.asarray(b, jnp.float32), (1, -1)) for b in biases]
    return weights_c, biases_c


def _choose_tiling(batch: int, batch_tile: int):
    """Pick (tm, num_tiles, padded_batch) with minimal padding.

    >= 2 tiles whenever the batch supports it so v7x's 'parallel' axis can use
    both TensorCores; tm is 16-aligned for bf16 sublane packing.
    """
    num_tiles = max(2, pl.cdiv(batch, batch_tile))
    # don't fragment tiny batches into sub-16-row tiles
    num_tiles = min(num_tiles, max(1, pl.cdiv(batch, _BF16_SUBLANE)))
    tm = _round_up(max(1, pl.cdiv(batch, num_tiles)), _BF16_SUBLANE)
    padded_batch = tm * num_tiles
    return tm, num_tiles, padded_batch


def coupling_network_forward(x, weights_c, biases_c, *,
                             compute_dtype=jnp.bfloat16,
                             batch_tile=1024):
    """Fused coupling-MLP forward as a single batch-tiled Pallas call.

    x:         (batch, input_dim // 2) float32
    weights_c: list of (in, out) arrays already cast to compute_dtype
    biases_c:  list of (1, out) float32 arrays
    Returns (batch, output_dim) float32.
    """
    num_hidden_layers = len(weights_c) - 1
    batch, in_dim = x.shape
    out_dim = weights_c[-1].shape[1]
    dims = [in_dim] + [w.shape[1] for w in weights_c]   # true (unpadded) dims

    tm, num_tiles, padded_batch = _choose_tiling(batch, int(batch_tile))

    x = jnp.asarray(x, jnp.float32)
    if padded_batch != batch:
        x = jnp.pad(x, ((0, padded_batch - batch), (0, 0)))

    # ---- specs: x tile streams over the batch; params are VMEM-resident ------
    in_specs = [pl.BlockSpec((tm, in_dim), lambda i: (i, 0))]
    args = [x]
    for wp, bp in zip(weights_c, biases_c):
        in_specs.append(pl.BlockSpec(wp.shape, lambda i: (0, 0)))   # resident
        in_specs.append(pl.BlockSpec(bp.shape, lambda i: (0, 0)))   # resident
        args.append(wp)
        args.append(bp)
    # NOTE: out_dim < 128 makes the VMEM store masked (vst.msk); correct, and
    # far cheaper than writing a 128-padded f32 slab to HBM + re-slicing.
    out_specs = pl.BlockSpec((tm, out_dim), lambda i: (i, 0))

    # ---- honest VMEM budget & cost estimate (true dims, not padded) ----------
    cd_bytes = jnp.dtype(compute_dtype).itemsize
    max_dim = max(dims)
    param_bytes = sum(int(w.size) * cd_bytes for w in weights_c) \
        + sum(int(b.size) * 4 for b in biases_c)
    io_bytes = 2 * tm * in_dim * 4 + 2 * tm * out_dim * 4   # double-buffered tiles
    act_bytes = 2 * tm * max_dim * (4 + cd_bytes)           # live activations slack
    vmem_limit = min(max(2 * (2 * param_bytes + io_bytes + act_bytes), 4 << 20),
                     32 << 20)

    flops = 2 * batch * sum(dims[i] * dims[i + 1] for i in range(len(weights_c)))
    bytes_accessed = batch * in_dim * 4 + param_bytes + batch * out_dim * 4

    kernel = make_mlp_kernel(num_hidden_layers, compute_dtype)

    out_padded = pl.pallas_call(
        kernel,
        out_shape=jax.ShapeDtypeStruct((padded_batch, out_dim), jnp.float32),
        grid=(num_tiles,),
        in_specs=in_specs,
        out_specs=out_specs,
        compiler_params=pltpu.CompilerParams(
            dimension_semantics=("parallel",),
            vmem_limit_bytes=int(vmem_limit),
        ),
        cost_estimate=pl.CostEstimate(
            flops=int(flops), transcendentals=0, bytes_accessed=int(bytes_accessed)),
    )(*args)

    return out_padded[:batch] if padded_batch != batch else out_padded


# ---------------------------------------------------------------------------
# Parameter init matching CouplingNetwork._init_weights
# ---------------------------------------------------------------------------
def init_coupling_network_params(key, input_dim, hidden_dim, num_layers, output_dim):
    """Hidden Linear layers: xavier_uniform_ weight, zero bias.
    Final Linear layer: zero weight, zero bias.
    Returns weights in (in, out) layout, biases in (1, out) layout (float32)."""
    weights, biases = [], []
    current_dim = input_dim // 2
    for _ in range(num_layers):
        key, sub = jax.random.split(key)
        fan_in, fan_out = current_dim, hidden_dim
        bound = math.sqrt(6.0 / (fan_in + fan_out))
        w = jax.random.uniform(sub, (fan_in, fan_out), jnp.float32, -bound, bound)
        weights.append(w)
        biases.append(jnp.zeros((1, fan_out), jnp.float32))
        current_dim = hidden_dim
    weights.append(jnp.zeros((hidden_dim, output_dim), jnp.float32))
    biases.append(jnp.zeros((1, output_dim), jnp.float32))
    return weights, biases


def reference_forward(x, weights, biases, compute_dtype=jnp.float32):
    """Pure-JAX reference; with compute_dtype=bf16 it mirrors the kernel's casts."""
    h = x.astype(compute_dtype)
    for i, (w, b) in enumerate(zip(weights, biases)):
        h = jnp.dot(h, w.astype(compute_dtype),
                    preferred_element_type=jnp.float32) + b.reshape(1, -1)
        if i < len(weights) - 1:
            h = jnp.maximum(h, 0.0).astype(compute_dtype)
    return h


if __name__ == "__main__":
    # Config mirrors CouplingLayerConfig(input_dim=8, hidden_dim=32, num_layers=2),
    # output_dim=8 (additive coupling head). Network input dim = input_dim // 2 = 4.
    input_dim = 8
    hidden_dim = 32
    num_layers = 2
    output_dim = 8

    key = jax.random.PRNGKey(0)

    # --- Case A: documented init (final layer zeroed) -> output exactly zeros ---
    key, xkey = jax.random.split(key)
    batch_a = 8
    x_a = jax.random.normal(xkey, (batch_a, input_dim // 2), jnp.float32)
    weights, biases = init_coupling_network_params(
        key, input_dim, hidden_dim, num_layers, output_dim)
    w_bf16, b_f32 = prepare_coupling_params(weights, biases, jnp.bfloat16)
    out_a = jax.block_until_ready(coupling_network_forward(x_a, w_bf16, b_f32))
    assert out_a.shape == (batch_a, output_dim)
    assert jnp.allclose(out_a, 0.0), "zero-init final layer must give zero output"

    # --- Case B: non-zero final layer, batch not a tile multiple (exercise math) ---
    key, xkey, wkey = jax.random.split(key, 3)
    batch_b = 200
    x_b = jax.random.normal(xkey, (batch_b, input_dim // 2), jnp.float32)
    bound = math.sqrt(6.0 / (hidden_dim + output_dim))
    weights_b = list(weights)
    weights_b[-1] = jax.random.uniform(
        wkey, (hidden_dim, output_dim), jnp.float32, -bound, bound)

    wb_bf16, bb_f32 = prepare_coupling_params(weights_b, biases, jnp.bfloat16)
    out_b = jax.block_until_ready(
        coupling_network_forward(x_b, wb_bf16, bb_f32, batch_tile=64))
    assert out_b.shape == (batch_b, output_dim)

    # tight check vs reference with identical bf16-input / f32-accum casts
    ref_bf16 = reference_forward(x_b, weights_b, biases, compute_dtype=jnp.bfloat16)
    assert jnp.allclose(out_b, ref_bf16, atol=1e-4, rtol=1e-4), \
        "mismatch vs bf16-cast reference"
    # loose check vs pure-f32 reference (bf16 input quantization tolerance)
    ref_f32 = reference_forward(x_b, weights_b, biases, compute_dtype=jnp.float32)
    assert jnp.allclose(out_b, ref_f32, atol=5e-2, rtol=5e-2), \
        "mismatch vs f32 reference"

    # --- Case C: exact-precision fallback (compute_dtype=float32) ---------------
    wb_f32, _ = prepare_coupling_params(weights_b, biases, jnp.float32)
    out_c = jax.block_until_ready(
        coupling_network_forward(x_b, wb_f32, bb_f32, compute_dtype=jnp.float32))
    assert jnp.allclose(out_c, ref_f32, atol=1e-5, rtol=1e-5), \
        "f32 compute path must match f32 reference tightly"

    print("KERNEL_OK")
</pallas_src>

<mosaic_0001>
module attributes {stable_mosaic.version = 11 : i64} {
  func.func @kernel(%arg0: i32, %arg1: memref<16x4xf32, #tpu.memory_space<vmem>>, %arg2: memref<4x32xbf16, #tpu.memory_space<vmem>>, %arg3: memref<1x32xf32, #tpu.memory_space<vmem>>, %arg4: memref<32x32xbf16, #tpu.memory_space<vmem>>, %arg5: memref<1x32xf32, #tpu.memory_space<vmem>>, %arg6: memref<32x8xbf16, #tpu.memory_space<vmem>>, %arg7: memref<1x8xf32, #tpu.memory_space<vmem>>, %arg8: memref<16x8xf32, #tpu.memory_space<vmem>>) attributes {dimension_semantics = [#tpu.dimension_semantics<parallel>], iteration_bounds = array<i64: 1>, scalar_prefetch = 0 : i64, scratch_operands = 0 : i64, tpu.core_type = #tpu.core_type<tc>, window_params = [{transform_indices = @transform_0, window_bounds = array<i64: 16, 4>}, {pipeline_mode = #tpu.pipeline_mode<synchronous>, transform_indices = @transform_1, window_bounds = array<i64: 4, 32>}, {pipeline_mode = #tpu.pipeline_mode<synchronous>, transform_indices = @transform_2, window_bounds = array<i64: 1, 32>}, {pipeline_mode = #tpu.pipeline_mode<synchronous>, transform_indices = @transform_3, window_bounds = array<i64: 32, 32>}, {pipeline_mode = #tpu.pipeline_mode<synchronous>, transform_indices = @transform_4, window_bounds = array<i64: 1, 32>}, {pipeline_mode = #tpu.pipeline_mode<synchronous>, transform_indices = @transform_5, window_bounds = array<i64: 32, 8>}, {pipeline_mode = #tpu.pipeline_mode<synchronous>, transform_indices = @transform_6, window_bounds = array<i64: 1, 8>}, {transform_indices = @transform_7, window_bounds = array<i64: 16, 8>}]} {
    %c0 = arith.constant 0 : index
    %c0_0 = arith.constant 0 : index
    %0 = vector.load %arg1[%c0, %c0_0] : memref<16x4xf32, #tpu.memory_space<vmem>>, vector<16x4xf32>
    %1 = arith.truncf %0 : vector<16x4xf32> to vector<16x4xbf16>
    %c0_1 = arith.constant 0 : index
    %c0_2 = arith.constant 0 : index
    %2 = vector.load %arg2[%c0_1, %c0_2] : memref<4x32xbf16, #tpu.memory_space<vmem>>, vector<4x32xbf16>
    %c0_3 = arith.constant 0 : index
    %c0_4 = arith.constant 0 : index
    %3 = vector.load %arg3[%c0_3, %c0_4] : memref<1x32xf32, #tpu.memory_space<vmem>>, vector<1x32xf32>
    %cst = arith.constant dense<0.000000e+00> : vector<16x32xf32>
    %4 = tpu.matmul %1, %2, %cst {dimension_numbers = #tpu.dot_dimension_numbers<[1], [0], [0], [1], [0, 0, 1, 1], [], []>} : vector<16x4xbf16>, vector<4x32xbf16>, vector<16x32xf32> -> vector<16x32xf32>
    %5 = vector.broadcast %3 : vector<1x32xf32> to vector<16x32xf32>
    %6 = arith.addf %4, %5 : vector<16x32xf32>
    %cst_5 = arith.constant 0.000000e+00 : f32
    %7 = vector.broadcast %cst_5 : f32 to vector<16x32xf32>
    %8 = arith.maximumf %6, %7 : vector<16x32xf32>
    %9 = arith.truncf %8 : vector<16x32xf32> to vector<16x32xbf16>
    %c0_6 = arith.constant 0 : index
    %c0_7 = arith.constant 0 : index
    %10 = vector.load %arg4[%c0_6, %c0_7] : memref<32x32xbf16, #tpu.memory_space<vmem>>, vector<32x32xbf16>
    %c0_8 = arith.constant 0 : index
    %c0_9 = arith.constant 0 : index
    %11 = vector.load %arg5[%c0_8, %c0_9] : memref<1x32xf32, #tpu.memory_space<vmem>>, vector<1x32xf32>
    %cst_10 = arith.constant dense<0.000000e+00> : vector<16x32xf32>
    %12 = tpu.matmul %9, %10, %cst_10 {dimension_numbers = #tpu.dot_dimension_numbers<[1], [0], [0], [1], [0, 0, 1, 1], [], []>} : vector<16x32xbf16>, vector<32x32xbf16>, vector<16x32xf32> -> vector<16x32xf32>
    %13 = vector.broadcast %11 : vector<1x32xf32> to vector<16x32xf32>
    %14 = arith.addf %12, %13 : vector<16x32xf32>
    %cst_11 = arith.constant 0.000000e+00 : f32
    %15 = vector.broadcast %cst_11 : f32 to vector<16x32xf32>
    %16 = arith.maximumf %14, %15 : vector<16x32xf32>
    %17 = arith.truncf %16 : vector<16x32xf32> to vector<16x32xbf16>
    %c0_12 = arith.constant 0 : index
    %c0_13 = arith.constant 0 : index
    %18 = vector.load %arg6[%c0_12, %c0_13] : memref<32x8xbf16, #tpu.memory_space<vmem>>, vector<32x8xbf16>
    %c0_14 = arith.constant 0 : index
    %c0_15 = arith.constant 0 : index
    %19 = vector.load %arg7[%c0_14, %c0_15] : memref<1x8xf32, #tpu.memory_space<vmem>>, vector<1x8xf32>
    %cst_16 = arith.constant dense<0.000000e+00> : vector<16x8xf32>
    %20 = tpu.matmul %17, %18, %cst_16 {dimension_numbers = #tpu.dot_dimension_numbers<[1], [0], [0], [1], [0, 0, 1, 1], [], []>} : vector<16x32xbf16>, vector<32x8xbf16>, vector<16x8xf32> -> vector<16x8xf32>
    %21 = vector.broadcast %19 : vector<1x8xf32> to vector<16x8xf32>
    %22 = arith.addf %20, %21 : vector<16x8xf32>
    %c0_17 = arith.constant 0 : index
    %c0_18 = arith.constant 0 : index
    %23 = vector.load %arg8[%c0_17, %c0_18] : memref<16x8xf32, #tpu.memory_space<vmem>>, vector<16x8xf32>
    tpu.vector_store %arg8[%c0_17, %c0_18], %22 {strides = array<i32>} : memref<16x8xf32, #tpu.memory_space<vmem>>, vector<16x8xf32>,
    return
  }
  func.func @transform_0(%arg0: i32) -> (i32, i32) {
    %c0_i32 = arith.constant 0 : i32
    %c0_i32_0 = arith.constant 0 : i32
    return %arg0, %c0_i32 : i32, i32
  }
  func.func @transform_1(%arg0: i32) -> (i32, i32) {
    %c0_i32 = arith.constant 0 : i32
    %c0_i32_0 = arith.constant 0 : i32
    %c0_i32_1 = arith.constant 0 : i32
    return %c0_i32, %c0_i32_0 : i32, i32
  }
  func.func @transform_2(%arg0: i32) -> (i32, i32) {
    %c0_i32 = arith.constant 0 : i32
    %c0_i32_0 = arith.constant 0 : i32
    %c0_i32_1 = arith.constant 0 : i32
    return %c0_i32, %c0_i32_0 : i32, i32
  }
  func.func @transform_3(%arg0: i32) -> (i32, i32) {
    %c0_i32 = arith.constant 0 : i32
    %c0_i32_0 = arith.constant 0 : i32
    %c0_i32_1 = arith.constant 0 : i32
    return %c0_i32, %c0_i32_0 : i32, i32
  }
  func.func @transform_4(%arg0: i32) -> (i32, i32) {
    %c0_i32 = arith.constant 0 : i32
    %c0_i32_0 = arith.constant 0 : i32
    %c0_i32_1 = arith.constant 0 : i32
    return %c0_i32, %c0_i32_0 : i32, i32
  }
  func.func @transform_5(%arg0: i32) -> (i32, i32) {
    %c0_i32 = arith.constant 0 : i32
    %c0_i32_0 = arith.constant 0 : i32
    %c0_i32_1 = arith.constant 0 : i32
    return %c0_i32, %c0_i32_0 : i32, i32
  }
  func.func @transform_6(%arg0: i32) -> (i32, i32) {
    %c0_i32 = arith.constant 0 : i32
    %c0_i32_0 = arith.constant 0 : i32
    %c0_i32_1 = arith.constant 0 : i32
    return %c0_i32, %c0_i32_0 : i32, i32
  }
  func.func @transform_7(%arg0: i32) -> (i32, i32) {
    %c0_i32 = arith.constant 0 : i32
    %c0_i32_0 = arith.constant 0 : i32
    return %arg0, %c0_i32 : i32, i32
  }
}

</mosaic_0001>

<bundles_post_ra>
// kernel: tpu_custom_call.1
= control target key start
LH: loop header
LB: loop body
LE: loop exit
PB: predicated region body
PF: predicated region fallthrough
CT: control target
= control target key end

     0   :  { %vm42_vm0 = vcmask 1041408   ;;  %v281_v0 = vmov 0.0   ;;  %vm282_vm1 = vmmov 0   ;;  %vm38_vm2 = vcmask 31744   ;;  %s361_s1 = inlined_call_operand.vmem [shape: bf16[4,32], index: 1, kind: input, shape index: {}]   ;;  %s362_s0 = inlined_call_operand.vmem [shape: f32[16,4], index: 0, kind: input, shape index: {}]   ;;  %s363_s3 = inlined_call_operand.vmem [shape: bf16[32,32], index: 3, kind: input, shape index: {}]   ;;  %s364_s2 = inlined_call_operand.vmem [shape: f32[1,32], index: 2, kind: input, shape index: {}]   ;;  %s365_s5 = inlined_call_operand.vmem [shape: bf16[32,8], index: 5, kind: input, shape index: {}]   ;;  %s366_s4 = inlined_call_operand.vmem [shape: f32[1,32], index: 4, kind: input, shape index: {}]   ;;  %s367_s6 = inlined_call_operand.vmem [shape: f32[1,8], index: 6, kind: input, shape index: {}]   ;;  %s368_s7 = inlined_call_operand.vmem [shape: f32[16,8], index: 7, kind: output, shape index: {}]  }
   0x1   :  { %253 = vmatprep.subr.bf16.mxu0 %v281_v0  ;;  %v30_v1 = vld [vmem:[%s361_s1] sm:$0x3]  ;;  %255 = vmatprep.mubr.msk.bf16.mxu0 %vm282_vm1, %v281_v0  ;;  %v28_v3 = vld [vmem:[%s362_s0 + $0x8] sm:$0xff]  ;;  %vm113_vm3 = vcmask 261120   ;;  %vm228_vm4 = vcmask 64512  }
   0x2   :  { %v27_v2 = vld [vmem:[%s362_s0] sm:$0xff]  ;;  %v44_v4 = vsel %vm42_vm0, %v30_v1, 0  ;;  %259 = vmatprep.subr.bf16.mxu1 %v281_v0  ;;  %263 = vmatprep.mubr.msk.bf16.mxu1 %vm282_vm1, %v281_v0  ;;  %v277_v6 = vld [vmem:[%s363_s3 + $0x8] sm:$0xff]  }
   0x3   :  { %v29_v5 = vpack.c.bf16 %v28_v3, %v27_v2  ;;  %254 = vmatpush3.bf16.msra.mxu0 %v44_v4  ;;  %260 = vmatpush3.bf16.msra.mxu1 %v277_v6  ;;  %v278_v7 = vld [vmem:[%s363_s3] sm:$0xff]   ;;  %v279_v18 = vld [vmem:[%s365_s5 + $0x8] sm:$0xff]  }
   0x4   :  { %267 = vmatprep.subr.bf16.mxu0 %v281_v0  ;;  %261 = vmatprep.subr.bf16.mxu1 %v281_v0  ;;  %v235_v8 = vld [vmem:[%s364_s2] ss:$0 sm:$0xff] }
   0x5   :  { %v280_v19 = vld [vmem:[%s365_s5] sm:$0xff]  }
   0x6   :  { %256 = vmatmul.mubr.msk.bf16.vlgmr.msra.gmra.mxu0 %vm38_vm2, %v29_v5  ;;  %v237_v20 = vld [vmem:[%s366_s4] ss:$0 sm:$0xff] }
   0x7   :  { %271 = vmatprep.mubr.msk.bf16.mxu0 %vm282_vm1, %v281_v0  ;;  %262 = vmatpush3.bf16.msra.mxu1 %v278_v7  ;;  %v241_v30 = vld [vmem:[%s367_s6] ss:$0 sm:$0xff] }
   0x8   :  { %268 = vmatpush3.bf16.msra.mxu0 %v279_v18 }
   0x9   :  { %269 = vmatprep.subr.bf16.mxu0 %v281_v0 }
   0xc   :  { %270 = vmatpush3.bf16.msra.mxu0 %v280_v19 }
  0xc6   :  { %v80_v9 = vpop.f32.mrf.mxu0 }
  0xc7   :  { %v81_v11 = vadd.f32 %v235_v8, %v80_v9 }
  0xc8   :  { %v257_v10 = vpop.f32.mrf.mxu0 }
  0xc9   :  { %v87_v15 = vmax.f32 %v81_v11, 0.0 }
  0xca   :  { %v83_v12 = vpop.f32.mrf.mxu0 }
  0xcb   :  { %v84_v13 = vadd.f32 %v235_v8, %v83_v12 }
  0xcc   :  { %v258_v14 = vpop.f32.mrf.mxu0 }
  0xcd   :  { %v88_v16 = vmax.f32 %v84_v13, 0.0 }
  0xcf   :  { %v89_v17 = vpack.c.bf16 %v88_v16, %v87_v15 }
  0xd1   :  { %264 = vmatmul.mubr.msk.bf16.vlgmr.msra.gmra.mxu1 %vm113_vm3, %v89_v17 }
 0x191   :  { %v151_v21 = vpop.f32.mrf.mxu1 }
 0x192   :  { %v152_v23 = vadd.f32 %v237_v20, %v151_v21 }
 0x193   :  { %v265_v22 = vpop.f32.mrf.mxu1 }
 0x194   :  { %v158_v27 = vmax.f32 %v152_v23, 0.0 }
 0x195   :  { %v154_v24 = vpop.f32.mrf.mxu1 }
 0x196   :  { %v155_v25 = vadd.f32 %v237_v20, %v154_v24 }
 0x197   :  { %v266_v26 = vpop.f32.mrf.mxu1 }
 0x198   :  { %v159_v28 = vmax.f32 %v155_v25, 0.0 }
 0x19a   :  { %v160_v29 = vpack.c.bf16 %v159_v28, %v158_v27 }
 0x19c   :  { %272 = vmatmul.mubr.msk.bf16.vlgmr.msra.gmra.mxu0 %vm113_vm3, %v160_v29 }
 0x25c   :  { %v221_v31 = vpop.f32.mrf.mxu0 }
 0x25d   :  { %v222_v32 = vadd.f32 %v241_v30, %v221_v31 }
 0x25e   :  { %v273_v33 = vpop.f32.mrf.mxu0 }
 0x25f   :  { %229 = vst.msk [vmem:[%s368_s7] sm:$0xff] %vm228_vm4, %v222_v32 }
 0x260   :  { %v224_v34 = vpop.f32.mrf.mxu0 }
 0x261   :  { %v225_v35 = vadd.f32 %v241_v30, %v224_v34 }
 0x262   :  { %v274_v36 = vpop.f32.mrf.mxu0 }
 0x263   :  { %230 = vst.msk [vmem:[%s368_s7 + $0x8] sm:$0xff] %vm228_vm4, %v225_v35 }

</bundles_post_ra>
